<compile_context>
chip_gen: v6e
topology: v6e:2x2x1
jax: 0.10.0
libtpu: 0.0.40
codegen_flags: <defaults>
</compile_context>

<pallas_src>
import functools

import jax
import jax.numpy as jnp
from jax.experimental import pallas as pl
from jax.experimental.pallas import tpu as pltpu

_LANE = 128                     # lane width (last dim of every tile)
_SUBLANE_BF16 = 16              # bf16 packs 16 rows per sublane group
_ACC_BUDGET_BYTES = 96 * 1024   # keep live f32 accumulator well under the 256 KiB vreg file


def _round_up(n, m):
    return ((n + m - 1) // m) * m


def _fused_mlp_kernel(*refs, num_layers):
    """refs = (x_ref, w0, b0, w1, b1, ..., w_{L-1}, b_{L-1}, o_ref).

    Whole MLP in one invocation; activations stay in registers (the batch tile
    is capped so they fit), so the only VMEM traffic is the x-tile load, the
    weight/bias loads and one lane-dense output store.  The layer loop is a
    static Python unroll, so each bias broadcast is emitted exactly once.
    """
    x_ref = refs[0]
    o_ref = refs[-1]
    acc = x_ref[...]  # bf16 activations
    for i in range(num_layers):
        w_ref = refs[1 + 2 * i]
        b_ref = refs[2 + 2 * i]
        # bf16 x bf16 on the MXU, f32 accumulation.
        acc = jnp.dot(acc, w_ref[...], preferred_element_type=jnp.float32)
        acc = acc + b_ref[...]                               # (tb,D) + (1,D), f32 bias
        if i < num_layers - 1:
            acc = jnp.maximum(acc, 0.0).astype(jnp.bfloat16)  # ReLU, back to bf16 for next MXU
        else:
            # Exact sigmoid (exp on the EUP, exact divide) -- approx reciprocal
            # was the source of the previous correctness failure.
            acc = 1.0 / (1.0 + jnp.exp(-acc))
    o_ref[...] = acc.astype(o_ref.dtype)


def _pick_batch_tile(batch, max_feat_padded):
    """MXU/lane-friendly batch tile, capped by the accumulator vreg budget."""
    cap = max(_SUBLANE_BF16,
              (_ACC_BUDGET_BYTES // (4 * max_feat_padded)) // _SUBLANE_BF16 * _SUBLANE_BF16)
    if batch <= _LANE:
        # Small batch: one (or few) step(s), no padded-batch waste.
        tb = min(_round_up(batch, _SUBLANE_BF16), cap)
    else:
        # Large batch: 128-aligned M tile (full MXU cadence on v5e/v6e/v7x) and
        # >= 2 grid steps so the "parallel" axis shards across v7x's two TCs.
        tb = min(_LANE, cap)
    return max(tb, _SUBLANE_BF16)


@functools.partial(jax.jit, static_argnames=("out_dim",))
def channel_encoder_forward(x, ws_p, bs_p, *, out_dim):
    """x: (B, d0) f32. ws_p[i]: (Pi, Pi+1) bf16, pre-padded. bs_p[i]: (1, Pi+1) f32."""
    num_layers = len(ws_p)
    B, d0 = x.shape
    p_dims = [ws_p[0].shape[0]] + [w.shape[1] for w in ws_p]

    tb = _pick_batch_tile(B, max(p_dims))
    b_pad = _round_up(B, tb)

    # Only the activation is padded per call (params were pre-padded in __init__).
    x_p = jnp.zeros((b_pad, p_dims[0]), jnp.bfloat16).at[:B, :d0].set(x.astype(jnp.bfloat16))

    grid = (b_pad // tb,)
    _x_map = lambda i: (i, 0)
    _wb_map = lambda i: (0, 0)  # constant index_map: weights stay resident across the batch grid

    in_specs = [pl.BlockSpec((tb, p_dims[0]), _x_map, memory_space=pltpu.MemorySpace.VMEM)]
    for li in range(num_layers):
        in_specs.append(pl.BlockSpec((p_dims[li], p_dims[li + 1]), _wb_map,
                                     memory_space=pltpu.MemorySpace.VMEM))
        in_specs.append(pl.BlockSpec((1, p_dims[li + 1]), _wb_map,
                                     memory_space=pltpu.MemorySpace.VMEM))
    out_spec = pl.BlockSpec((tb, p_dims[-1]), _x_map, memory_space=pltpu.MemorySpace.VMEM)

    # Explicit VMEM budget: double-buffered params + IO tiles + headroom, so the
    # default 16/32 MiB scoped-VMEM ceiling never bites.
    # TODO(synk): for wide hidden layers, add pipeline_mode=pl.Buffered(1) on the
    # (grid-invariant) weight/bias specs and/or tile the out-feature axis instead
    # of keeping every layer's weights VMEM-resident.
    param_bytes = (sum(int(w.size) * w.dtype.itemsize for w in ws_p)
                   + sum(int(b.size) * b.dtype.itemsize for b in bs_p))
    io_bytes = tb * p_dims[0] * 2 + tb * p_dims[-1] * 4
    vmem_limit = min(int(2 * (param_bytes + io_bytes)) + (4 << 20), 96 << 20)

    flops = sum(2 * b_pad * p_dims[i] * p_dims[i + 1] for i in range(num_layers))
    bytes_accessed = int(x_p.size * 2 + param_bytes + b_pad * p_dims[-1] * 4)

    kernel = functools.partial(_fused_mlp_kernel, num_layers=num_layers)
    y_p = pl.pallas_call(
        kernel,
        out_shape=jax.ShapeDtypeStruct((b_pad, p_dims[-1]), jnp.float32),
        grid=grid,
        in_specs=in_specs,
        out_specs=out_spec,
        compiler_params=pltpu.CompilerParams(
            dimension_semantics=("parallel",),
            vmem_limit_bytes=vmem_limit),
        cost_estimate=pl.CostEstimate(flops=flops,
                                      transcendentals=b_pad * p_dims[-1],
                                      bytes_accessed=bytes_accessed),
    )(x_p, *[a for pair in zip(ws_p, bs_p) for a in pair])

    return y_p[:B, :out_dim]


class ChannelEncoderPallas:
    """JAX/Pallas port of ChannelEncoder: MLP with ReLU hidden activations and a
    Sigmoid on the final layer, fused into a single Pallas TPU kernel.
    `.to(device)` in the torch module is a no-op here (JAX handles placement).
    """

    def __init__(self, input_length, layer_sizes, key):
        layer_sizes = tuple(layer_sizes)
        self.out_dim = layer_sizes[-1]
        # Unpadded f32 params (torch-equivalent, weights transposed to (in, out)).
        self.weights, self.biases = [], []
        in_features = input_length
        for out_features in layer_sizes:
            key, kw, kb = jax.random.split(key, 3)
            bound = 1.0 / (in_features ** 0.5)  # PyTorch Linear default init range
            w = jax.random.uniform(kw, (in_features, out_features), jnp.float32, -bound, bound)
            b = jax.random.uniform(kb, (1, out_features), jnp.float32, -bound, bound)
            self.weights.append(w)
            self.biases.append(b)
            in_features = out_features

        # Pre-pad ONCE (perf feedback): lane-pad every feature dim to 128, cast
        # weights to bf16 (halves HBM/VMEM, MXU-native on v6e/v7x); bias stays f32.
        dims = [input_length] + list(layer_sizes)
        p_dims = [_round_up(d, _LANE) for d in dims]
        self.ws_p, self.bs_p = [], []
        for i, (w, b) in enumerate(zip(self.weights, self.biases)):
            wp = jnp.zeros((p_dims[i], p_dims[i + 1]), jnp.bfloat16)
            wp = wp.at[:dims[i], :dims[i + 1]].set(w.astype(jnp.bfloat16))
            bp = jnp.zeros((1, p_dims[i + 1]), jnp.float32).at[:, :dims[i + 1]].set(b)
            self.ws_p.append(wp)
            self.bs_p.append(bp)

    def __call__(self, x):
        return channel_encoder_forward(x, self.ws_p, self.bs_p, out_dim=self.out_dim)


if __name__ == "__main__":
    key = jax.random.PRNGKey(0)
    key_x, key_p = jax.random.split(key)

    batch = 8
    input_length = 32
    layer_sizes = (64, 48, 16)

    x = jax.random.normal(key_x, (batch, input_length), jnp.float32)

    model = ChannelEncoderPallas(input_length, layer_sizes, key_p)
    y = jax.block_until_ready(model(x))

    # Matched-precision reference: same bf16-matmul / f32-accumulate policy as
    # the kernel (tests the Pallas plumbing: tiling, padding, bias, activation).
    L = len(model.weights)
    ref = x
    for i, (w, b) in enumerate(zip(model.weights, model.biases)):
        ref = jnp.dot(ref.astype(jnp.bfloat16), w.astype(jnp.bfloat16),
                      preferred_element_type=jnp.float32) + b
        ref = (1.0 / (1.0 + jnp.exp(-ref))) if i == L - 1 else jnp.maximum(ref, 0.0)

    # Full-f32 reference: loose sanity bound covering the bf16 cast error.
    ref32 = x
    for i, (w, b) in enumerate(zip(model.weights, model.biases)):
        ref32 = ref32 @ w + b
        ref32 = jax.nn.sigmoid(ref32) if i == L - 1 else jnp.maximum(ref32, 0.0)

    assert y.shape == (batch, layer_sizes[-1])
    assert jnp.allclose(y, ref, atol=1e-3, rtol=1e-3), float(jnp.max(jnp.abs(y - ref)))
    assert jnp.allclose(y, ref32, atol=5e-2), float(jnp.max(jnp.abs(y - ref32)))

    print("KERNEL_OK")
</pallas_src>

<mosaic_0001>
module attributes {stable_mosaic.version = 11 : i64} {
  func.func @_fused_mlp_kernel(%arg0: i32, %arg1: memref<16x128xbf16, #tpu.memory_space<vmem>>, %arg2: memref<128x128xbf16, #tpu.memory_space<vmem>>, %arg3: memref<1x128xf32, #tpu.memory_space<vmem>>, %arg4: memref<128x128xbf16, #tpu.memory_space<vmem>>, %arg5: memref<1x128xf32, #tpu.memory_space<vmem>>, %arg6: memref<128x128xbf16, #tpu.memory_space<vmem>>, %arg7: memref<1x128xf32, #tpu.memory_space<vmem>>, %arg8: memref<16x128xf32, #tpu.memory_space<vmem>>) attributes {dimension_semantics = [#tpu.dimension_semantics<parallel>], iteration_bounds = array<i64: 1>, scalar_prefetch = 0 : i64, scratch_operands = 0 : i64, tpu.core_type = #tpu.core_type<tc>, window_params = [{transform_indices = @transform_0, window_bounds = array<i64: 16, 128>}, {pipeline_mode = #tpu.pipeline_mode<synchronous>, transform_indices = @transform_1, window_bounds = array<i64: 128, 128>}, {pipeline_mode = #tpu.pipeline_mode<synchronous>, transform_indices = @transform_2, window_bounds = array<i64: 1, 128>}, {pipeline_mode = #tpu.pipeline_mode<synchronous>, transform_indices = @transform_3, window_bounds = array<i64: 128, 128>}, {pipeline_mode = #tpu.pipeline_mode<synchronous>, transform_indices = @transform_4, window_bounds = array<i64: 1, 128>}, {pipeline_mode = #tpu.pipeline_mode<synchronous>, transform_indices = @transform_5, window_bounds = array<i64: 128, 128>}, {pipeline_mode = #tpu.pipeline_mode<synchronous>, transform_indices = @transform_6, window_bounds = array<i64: 1, 128>}, {transform_indices = @transform_7, window_bounds = array<i64: 16, 128>}]} {
    %c0 = arith.constant 0 : index
    %c0_0 = arith.constant 0 : index
    %0 = vector.load %arg1[%c0, %c0_0] : memref<16x128xbf16, #tpu.memory_space<vmem>>, vector<16x128xbf16>
    %c0_1 = arith.constant 0 : index
    %c0_2 = arith.constant 0 : index
    %1 = vector.load %arg2[%c0_1, %c0_2] : memref<128x128xbf16, #tpu.memory_space<vmem>>, vector<128x128xbf16>
    %cst = arith.constant dense<0.000000e+00> : vector<16x128xf32>
    %2 = tpu.matmul %0, %1, %cst {dimension_numbers = #tpu.dot_dimension_numbers<[1], [0], [0], [1], [0, 0, 1, 1], [], []>} : vector<16x128xbf16>, vector<128x128xbf16>, vector<16x128xf32> -> vector<16x128xf32>
    %c0_3 = arith.constant 0 : index
    %c0_4 = arith.constant 0 : index
    %3 = vector.load %arg3[%c0_3, %c0_4] : memref<1x128xf32, #tpu.memory_space<vmem>>, vector<1x128xf32>
    %4 = vector.broadcast %3 : vector<1x128xf32> to vector<16x128xf32>
    %5 = arith.addf %2, %4 : vector<16x128xf32>
    %cst_5 = arith.constant 0.000000e+00 : f32
    %6 = vector.broadcast %cst_5 : f32 to vector<16x128xf32>
    %7 = arith.maximumf %5, %6 : vector<16x128xf32>
    %8 = arith.truncf %7 : vector<16x128xf32> to vector<16x128xbf16>
    %c0_6 = arith.constant 0 : index
    %c0_7 = arith.constant 0 : index
    %9 = vector.load %arg4[%c0_6, %c0_7] : memref<128x128xbf16, #tpu.memory_space<vmem>>, vector<128x128xbf16>
    %cst_8 = arith.constant dense<0.000000e+00> : vector<16x128xf32>
    %10 = tpu.matmul %8, %9, %cst_8 {dimension_numbers = #tpu.dot_dimension_numbers<[1], [0], [0], [1], [0, 0, 1, 1], [], []>} : vector<16x128xbf16>, vector<128x128xbf16>, vector<16x128xf32> -> vector<16x128xf32>
    %c0_9 = arith.constant 0 : index
    %c0_10 = arith.constant 0 : index
    %11 = vector.load %arg5[%c0_9, %c0_10] : memref<1x128xf32, #tpu.memory_space<vmem>>, vector<1x128xf32>
    %12 = vector.broadcast %11 : vector<1x128xf32> to vector<16x128xf32>
    %13 = arith.addf %10, %12 : vector<16x128xf32>
    %cst_11 = arith.constant 0.000000e+00 : f32
    %14 = vector.broadcast %cst_11 : f32 to vector<16x128xf32>
    %15 = arith.maximumf %13, %14 : vector<16x128xf32>
    %16 = arith.truncf %15 : vector<16x128xf32> to vector<16x128xbf16>
    %c0_12 = arith.constant 0 : index
    %c0_13 = arith.constant 0 : index
    %17 = vector.load %arg6[%c0_12, %c0_13] : memref<128x128xbf16, #tpu.memory_space<vmem>>, vector<128x128xbf16>
    %cst_14 = arith.constant dense<0.000000e+00> : vector<16x128xf32>
    %18 = tpu.matmul %16, %17, %cst_14 {dimension_numbers = #tpu.dot_dimension_numbers<[1], [0], [0], [1], [0, 0, 1, 1], [], []>} : vector<16x128xbf16>, vector<128x128xbf16>, vector<16x128xf32> -> vector<16x128xf32>
    %c0_15 = arith.constant 0 : index
    %c0_16 = arith.constant 0 : index
    %19 = vector.load %arg7[%c0_15, %c0_16] : memref<1x128xf32, #tpu.memory_space<vmem>>, vector<1x128xf32>
    %20 = vector.broadcast %19 : vector<1x128xf32> to vector<16x128xf32>
    %21 = arith.addf %18, %20 : vector<16x128xf32>
    %cst_17 = arith.constant 0.000000e+00 : f32
    %22 = vector.broadcast %cst_17 : f32 to vector<16x128xf32>
    %23 = arith.subf %22, %21 : vector<16x128xf32>
    %24 = math.exp %23 : vector<16x128xf32>
    %cst_18 = arith.constant 1.000000e+00 : f32
    %25 = vector.broadcast %cst_18 : f32 to vector<16x128xf32>
    %26 = arith.addf %25, %24 : vector<16x128xf32>
    %cst_19 = arith.constant 1.000000e+00 : f32
    %27 = vector.broadcast %cst_19 : f32 to vector<16x128xf32>
    %28 = arith.divf %27, %26 : vector<16x128xf32>
    %c0_20 = arith.constant 0 : index
    %c0_21 = arith.constant 0 : index
    %29 = vector.load %arg8[%c0_20, %c0_21] : memref<16x128xf32, #tpu.memory_space<vmem>>, vector<16x128xf32>
    tpu.vector_store %arg8[%c0_20, %c0_21], %28 {strides = array<i32>} : memref<16x128xf32, #tpu.memory_space<vmem>>, vector<16x128xf32>,
    return
  }
  func.func @transform_0(%arg0: i32) -> (i32, i32) {
    %c0_i32 = arith.constant 0 : i32
    %c0_i32_0 = arith.constant 0 : i32
    return %arg0, %c0_i32 : i32, i32
  }
  func.func @transform_1(%arg0: i32) -> (i32, i32) {
    %c0_i32 = arith.constant 0 : i32
    %c0_i32_0 = arith.constant 0 : i32
    %c0_i32_1 = arith.constant 0 : i32
    return %c0_i32, %c0_i32_0 : i32, i32
  }
  func.func @transform_2(%arg0: i32) -> (i32, i32) {
    %c0_i32 = arith.constant 0 : i32
    %c0_i32_0 = arith.constant 0 : i32
    %c0_i32_1 = arith.constant 0 : i32
    return %c0_i32, %c0_i32_0 : i32, i32
  }
  func.func @transform_3(%arg0: i32) -> (i32, i32) {
    %c0_i32 = arith.constant 0 : i32
    %c0_i32_0 = arith.constant 0 : i32
    %c0_i32_1 = arith.constant 0 : i32
    return %c0_i32, %c0_i32_0 : i32, i32
  }
  func.func @transform_4(%arg0: i32) -> (i32, i32) {
    %c0_i32 = arith.constant 0 : i32
    %c0_i32_0 = arith.constant 0 : i32
    %c0_i32_1 = arith.constant 0 : i32
    return %c0_i32, %c0_i32_0 : i32, i32
  }
  func.func @transform_5(%arg0: i32) -> (i32, i32) {
    %c0_i32 = arith.constant 0 : i32
    %c0_i32_0 = arith.constant 0 : i32
    %c0_i32_1 = arith.constant 0 : i32
    return %c0_i32, %c0_i32_0 : i32, i32
  }
  func.func @transform_6(%arg0: i32) -> (i32, i32) {
    %c0_i32 = arith.constant 0 : i32
    %c0_i32_0 = arith.constant 0 : i32
    %c0_i32_1 = arith.constant 0 : i32
    return %c0_i32, %c0_i32_0 : i32, i32
  }
  func.func @transform_7(%arg0: i32) -> (i32, i32) {
    %c0_i32 = arith.constant 0 : i32
    %c0_i32_0 = arith.constant 0 : i32
    return %arg0, %c0_i32 : i32, i32
  }
}

</mosaic_0001>

<bundles_post_ra>
// kernel: channel_encoder_forward.1
= control target key start
LH: loop header
LB: loop body
LE: loop exit
PB: predicated region body
PF: predicated region fallthrough
CT: control target
= control target key end

     0   :  { %12 = vsyncpa [#allocation3], 0  ;;  %s761_s0 = inlined_call_operand.vmem [shape: bf16[16,128], index: 0, kind: input, shape index: {}]   ;;  %s762_s1 = inlined_call_operand.hbm [shape: bf16[128,128], index: 1, kind: input, shape index: {}]   ;;  %s763_s2 = inlined_call_operand.vmem [shape: f32[1,128], index: 2, kind: input, shape index: {}]   ;;  %s764_s3 = inlined_call_operand.hbm [shape: bf16[128,128], index: 3, kind: input, shape index: {}]   ;;  %s765_s4 = inlined_call_operand.vmem [shape: f32[1,128], index: 4, kind: input, shape index: {}]   ;;  %s766_s5 = inlined_call_operand.hbm [shape: bf16[128,128], index: 5, kind: input, shape index: {}]   ;;  %s767_s6 = inlined_call_operand.vmem [shape: f32[1,128], index: 6, kind: input, shape index: {}]   ;;  %s768_s7 = inlined_call_operand.vmem [shape: f32[16,128], index: 7, kind: output, shape index: {}]  }
   0x1   :  { %13 = vsyncpa [#allocation5], 0  ;;  %s657_s24 = smov [#allocation4]   ;;  %s658_s26 = smov [#allocation2]  }
   0x2   :  { %s35_s25 = sshll.u32 %s657_s24, 4  ;;  %s21_s27 = sshll.u32 %s658_s26, 4  ;;  %s36_s25 = int_to_ptr.vmem [resolvable:$true] %s35_s25  ;;  %s22_s27 = int_to_ptr.vmem [resolvable:$true] %s21_s27 }
   0x3   :  { %s601_s28 = scalar_lea.vmem %s36_s25, 1024  ;;  %p606_p1 = scmp.lt.s32.totalorder %s36_s25, %s36_s25 }
   0x4   :  { %p602_p0 = scmp.ne.s32.totalorder %s36_s25, %s601_s28  ;;  %p607_p2 = scmp.lt.s32.totalorder %s601_s28, %s601_s28 }
   0x6   :  { %p608_p3 = por %p607_p2, %p606_p1 }
   0x8   :  { %p609_p4 = pnand %p608_p3, %p602_p0 }
   0xa   :  { %612 = shalt.err (!%p609_p4)
}
   0xb   :  { %s659_s29 = smov 64   ;;  %s660_s30 = smov 4  }
   0xc   :  { %41 = dma.hbm_to_vmem [thread:$0]  %s764_s3, 1024, %s36_s25, [#allocation5], %s659_s29, %s659_s29, %s660_s30  }
   0xd   :  { %s621_s10 = scalar_lea.vmem %s22_s27, 1024  ;;  %p626_p6 = scmp.lt.s32.totalorder %s22_s27, %s22_s27 }
   0xe   :  { %p622_p5 = scmp.ne.s32.totalorder %s22_s27, %s621_s10  ;;  %p627_p7 = scmp.lt.s32.totalorder %s621_s10, %s621_s10 }
  0x10   :  { %p628_p8 = por %p627_p7, %p626_p6 }
  0x12   :  { %p629_p9 = pnand %p628_p8, %p622_p5 }
  0x14   :  { %632 = shalt.err (!%p629_p9)
}
  0x15   :  { %27 = dma.hbm_to_vmem [thread:$0]  %s762_s1, 1024, %s22_s27, [#allocation3], %s659_s29, %s659_s29, %s660_s30  }
  0x16   :  { %s661_s13 = smov [#allocation6]  }
  0x17   :  { %s49_s14 = sshll.u32 %s661_s13, 4  ;;  %s50_s14 = int_to_ptr.vmem [resolvable:$true] %s49_s14 }
  0x18   :  { %s641_s15 = scalar_lea.vmem %s50_s14, 1024  ;;  %p646_p11 = scmp.lt.s32.totalorder %s50_s14, %s50_s14 }
  0x19   :  { %p642_p10 = scmp.ne.s32.totalorder %s50_s14, %s641_s15  ;;  %p647_p12 = scmp.lt.s32.totalorder %s641_s15, %s641_s15 }
  0x1b   :  { %p648_p13 = por %p647_p12, %p646_p11 }
  0x1d   :  { %p649_p0 = pnand %p648_p13, %p642_p10 }
  0x1f   :  { %652 = shalt.err (!%p649_p0)
}
  0x20   :  { %55 = dma.hbm_to_vmem [thread:$0]  %s766_s5, 1024, %s50_s14, [#allocation5], %s659_s29, %s659_s29, %s660_s30  }
  0x21   :  { %653 = dma.done.wait [#allocation3], 1024  }
  0x22   :  { %654 = vsyncadd [#allocation3], 4294966272 }
  0x23   :  { %655 = dma.done.wait [#allocation5], 2048  }
  0x24   :  { %656 = vsyncadd [#allocation5], 4294965248  ;;  %v662_v0 = vmov 0.0   ;;  %vm663_vm0 = vmmov 0   ;;  %v560_v1 = vld [vmem:[#allocation2 + $0x38] sm:$0xff]   ;;  %v561_v2 = vld [vmem:[#allocation2 + $0x30] sm:$0xff]  }
  0x25   :  { %493 = vmatprep.subr.bf16.mxu0 %v662_v0  ;;  %509 = vmatprep.mubr.msk.bf16.mxu0 %vm663_vm0, %v662_v0  ;;  %v562_v3 = vld [vmem:[#allocation2 + $0x28] sm:$0xff]   ;;  %v569_v4 = vld [vmem:[#allocation4 + $0x38] sm:$0xff]   ;;  %v563_v5 = vld [vmem:[#allocation2 + $0x20] sm:$0xff]  }
  0x26   :  { %513 = vmatprep.subr.bf16.mxu1 %v662_v0  ;;  %529 = vmatprep.mubr.msk.bf16.mxu1 %vm663_vm0, %v662_v0  ;;  %v570_v6 = vld [vmem:[#allocation4 + $0x30] sm:$0xff]   ;;  %v564_v7 = vld [vmem:[#allocation2 + $0x18] sm:$0xff]   ;;  %v571_v8 = vld [vmem:[#allocation4 + $0x28] sm:$0xff]  }
  0x27   :  { %494 = vmatpush3.bf16.msra.mxu0 %v560_v1  ;;  %514 = vmatpush3.bf16.msra.mxu1 %v569_v4  ;;  %v565_v9 = vld [vmem:[#allocation2 + $0x10] sm:$0xff]   ;;  %v572_v10 = vld [vmem:[#allocation4 + $0x20] sm:$0xff]   ;;  %v566_v11 = vld [vmem:[#allocation2 + $0x8] sm:$0xff]  }
  0x28   :  { %495 = vmatprep.subr.bf16.mxu0 %v662_v0  ;;  %515 = vmatprep.subr.bf16.mxu1 %v662_v0  ;;  %v573_v12 = vld [vmem:[#allocation4 + $0x18] sm:$0xff]   ;;  %v567_v13 = vld [vmem:[#allocation2] sm:$0xff]   ;;  %v574_v15 = vld [vmem:[#allocation4 + $0x10] sm:$0xff]  }
  0x29   :  { %v568_v14 = vld [vmem:[%s761_s0] sm:$0xff]   ;;  %v575_v16 = vld [vmem:[#allocation4 + $0x8] sm:$0xff]   ;;  %v577_v18 = vld [vmem:[#allocation6 + $0x38] sm:$0xff]  }
  0x2a   :  { %v576_v17 = vld [vmem:[#allocation4] sm:$0xff]   ;;  %v578_v19 = vld [vmem:[#allocation6 + $0x30] sm:$0xff]   ;;  %v579_v20 = vld [vmem:[#allocation6 + $0x28] sm:$0xff]  }
  0x2b   :  { %496 = vmatpush3.bf16.msra.mxu0 %v561_v2  ;;  %516 = vmatpush3.bf16.msra.mxu1 %v570_v6  ;;  %v580_v21 = vld [vmem:[#allocation6 + $0x20] sm:$0xff]   ;;  %v581_v22 = vld [vmem:[#allocation6 + $0x18] sm:$0xff]   ;;  %v582_v33 = vld [vmem:[#allocation6 + $0x10] sm:$0xff]  }
  0x2c   :  { %497 = vmatprep.subr.bf16.mxu0 %v662_v0  ;;  %517 = vmatprep.subr.bf16.mxu1 %v662_v0  ;;  %v438_v23 = vld [vmem:[%s763_s2] ss:$0 sm:$0xff]  ;;  %v583_v34 = vld [vmem:[#allocation6 + $0x8] sm:$0xff]  }
  0x2d   :  { %v584_v35 = vld [vmem:[#allocation6] sm:$0xff]  }
  0x2e   :  { %v448_v36 = vld [vmem:[%s765_s4] ss:$0 sm:$0xff] }
  0x2f   :  { %498 = vmatpush3.bf16.msra.mxu0 %v562_v3  ;;  %518 = vmatpush3.bf16.msra.mxu1 %v571_v8  ;;  %v457_v46 = vld [vmem:[%s767_s6] ss:$0 sm:$0xff] }
  0x30   :  { %499 = vmatprep.subr.bf16.mxu0 %v662_v0  ;;  %519 = vmatprep.subr.bf16.mxu1 %v662_v0 }
  0x33   :  { %500 = vmatpush3.bf16.msra.mxu0 %v563_v5  ;;  %520 = vmatpush3.bf16.msra.mxu1 %v572_v10 }
  0x34   :  { %501 = vmatprep.subr.bf16.mxu0 %v662_v0  ;;  %521 = vmatprep.subr.bf16.mxu1 %v662_v0 }
  0x37   :  { %502 = vmatpush3.bf16.msra.mxu0 %v564_v7  ;;  %522 = vmatpush3.bf16.msra.mxu1 %v573_v12 }
  0x38   :  { %503 = vmatprep.subr.bf16.mxu0 %v662_v0  ;;  %523 = vmatprep.subr.bf16.mxu1 %v662_v0 }
  0x3b   :  { %504 = vmatpush3.bf16.msra.mxu0 %v565_v9  ;;  %524 = vmatpush3.bf16.msra.mxu1 %v574_v15 }
  0x3c   :  { %505 = vmatprep.subr.bf16.mxu0 %v662_v0  ;;  %525 = vmatprep.subr.bf16.mxu1 %v662_v0 }
  0x3f   :  { %506 = vmatpush3.bf16.msra.mxu0 %v566_v11  ;;  %526 = vmatpush3.bf16.msra.mxu1 %v575_v16 }
  0x40   :  { %507 = vmatprep.subr.bf16.mxu0 %v662_v0  ;;  %527 = vmatprep.subr.bf16.mxu1 %v662_v0 }
  0x43   :  { %508 = vmatpush3.bf16.msra.mxu0 %v567_v13  ;;  %528 = vmatpush3.bf16.msra.mxu1 %v576_v17 }
  0x44   :  { %533 = vmatprep.subr.bf16.mxu0 %v662_v0 }
  0x46   :  { %510 = vmatmul.mubr.bf16.vlgmr.msra.gmra.mxu0 %v568_v14 }
  0x47   :  { %549 = vmatprep.mubr.msk.bf16.mxu0 %vm663_vm0, %v662_v0  ;;  %534 = vmatpush3.bf16.msra.mxu0 %v577_v18 }
  0x48   :  { %535 = vmatprep.subr.bf16.mxu0 %v662_v0 }
  0x4b   :  { %536 = vmatpush3.bf16.msra.mxu0 %v578_v19 }
  0x4c   :  { %537 = vmatprep.subr.bf16.mxu0 %v662_v0 }
  0x4f   :  { %538 = vmatpush3.bf16.msra.mxu0 %v579_v20 }
  0x50   :  { %539 = vmatprep.subr.bf16.mxu0 %v662_v0 }
  0x53   :  { %540 = vmatpush3.bf16.msra.mxu0 %v580_v21 }
  0x54   :  { %541 = vmatprep.subr.bf16.mxu0 %v662_v0 }
  0x57   :  { %542 = vmatpush3.bf16.msra.mxu0 %v581_v22 }
  0x58   :  { %543 = vmatprep.subr.bf16.mxu0 %v662_v0 }
  0x5b   :  { %544 = vmatpush3.bf16.msra.mxu0 %v582_v33 }
  0x5c   :  { %545 = vmatprep.subr.bf16.mxu0 %v662_v0 }
  0x5f   :  { %546 = vmatpush3.bf16.msra.mxu0 %v583_v34 }
  0x60   :  { %547 = vmatprep.subr.bf16.mxu0 %v662_v0 }
  0x63   :  { %548 = vmatpush3.bf16.msra.mxu0 %v584_v35 }
 0x106   :  { %v181_v24 = vpop.f32.mrf.mxu0 }
 0x107   :  { %v182_v26 = vadd.f32 %v438_v23, %v181_v24 }
 0x108   :  { %v511_v25 = vpop.f32.mrf.mxu0 }
 0x109   :  { %v188_v30 = vmax.f32 %v182_v26, 0.0 }
 0x10a   :  { %v184_v27 = vpop.f32.mrf.mxu0 }
 0x10b   :  { %v185_v28 = vadd.f32 %v438_v23, %v184_v27 }
 0x10c   :  { %v512_v29 = vpop.f32.mrf.mxu0 }
 0x10d   :  { %v189_v31 = vmax.f32 %v185_v28, 0.0 }
 0x10f   :  { %v190_v32 = vpack.c.bf16 %v189_v31, %v188_v30 }
 0x111   :  { %530 = vmatmul.mubr.bf16.vlgmr.msra.gmra.mxu1 %v190_v32 }
 0x1d1   :  { %v296_v37 = vpop.f32.mrf.mxu1 }
 0x1d2   :  { %v297_v39 = vadd.f32 %v448_v36, %v296_v37 }
 0x1d3   :  { %v531_v38 = vpop.f32.mrf.mxu1 }
 0x1d4   :  { %v303_v43 = vmax.f32 %v297_v39, 0.0 }
 0x1d5   :  { %v299_v40 = vpop.f32.mrf.mxu1 }
 0x1d6   :  { %v300_v41 = vadd.f32 %v448_v36, %v299_v40 }
 0x1d7   :  { %v532_v42 = vpop.f32.mrf.mxu1 }
 0x1d8   :  { %v304_v44 = vmax.f32 %v300_v41, 0.0 }
 0x1da   :  { %v305_v45 = vpack.c.bf16 %v304_v44, %v303_v43 }
 0x1dc   :  { %550 = vmatmul.mubr.bf16.vlgmr.msra.gmra.mxu0 %v305_v45 }
 0x29c   :  { %v411_v47 = vpop.f32.mrf.mxu0 }
 0x29d   :  { %v412_v48 = vadd.f32 %v457_v46, %v411_v47 }
 0x29e   :  { %v551_v49 = vpop.f32.mrf.mxu0 }
 0x29f   :  { %v418_v50 = vsub.f32 0.0, %v412_v48 }
 0x2a0   :  { %v414_v51 = vpop.f32.mrf.mxu0 }
 0x2a1   :  { %v420_v52 = vmul.f32 1.442695, %v418_v50  ;;  %v415_v53 = vadd.f32 %v457_v46, %v414_v51 }
 0x2a2   :  { %v552_v54 = vpop.f32.mrf.mxu0 }
 0x2a3   :  { %585 = vpow2.f32 %v420_v52  ;;  %v419_v55 = vsub.f32 0.0, %v415_v53 }
 0x2a5   :  { %v422_v56 = vmul.f32 1.442695, %v419_v55 }
 0x2a7   :  { %587 = vpow2.f32 %v422_v56 }
 0x2b0   :  { %v586_v57 = vpop.eup %585 }
 0x2b1   :  { %v424_v58 = vadd.f32 1.0, %v586_v57 }
 0x2b3   :  { %589 = vrcp.f32 %v424_v58 }
 0x2b4   :  { %v588_v59 = vpop.eup %587 }
 0x2b5   :  { %v425_v60 = vadd.f32 1.0, %v588_v59 }
 0x2b7   :  { %591 = vrcp.f32 %v425_v60 }
 0x2c0   :  { %v590_v61 = vpop.eup %589 }
 0x2c1   :  { %430 = vst [vmem:[%s768_s7] sm:$0xff] %v590_v61 }
 0x2c4   :  { %v592_v62 = vpop.eup %591 }
 0x2c5   :  { %431 = vst [vmem:[%s768_s7 + $0x8] sm:$0xff] %v592_v62 }
 0x2c6   :  { %436 = vsyncpa [#allocation3], 1 }
 0x2c7   :  { %437 = vsyncpa [#allocation5], 1 }

</bundles_post_ra>
